<compile_context>
chip_gen: v7x
topology: tpu7x:2x2x1
jax: 0.10.0
libtpu: 0.0.40
codegen_flags: <defaults>
</compile_context>

<pallas_src>
import jax
import jax.numpy as jnp
from jax.experimental import pallas as pl
from jax.experimental.pallas import tpu as pltpu

_EPS = 1e-5


def layernorm_kernel(x_ref, scale_ref, shift_ref, o_ref):
    x = x_ref[...].astype(jnp.float32)                       # (tm, D) in f32
    d = x.shape[-1]
    ones = jnp.ones((d, 1), jnp.float32)

    # Single-pass row moments via the (otherwise idle) MXU: sum(x) and
    # sum(x*x) as dot-with-ones, so neither reduction hits the XLU and the
    # variance reduction does not serialize behind the mean.
    s = jnp.dot(x, ones, preferred_element_type=jnp.float32)        # (tm, 1)
    s2 = jnp.dot(x * x, ones, preferred_element_type=jnp.float32)   # (tm, 1)

    inv_d = jnp.float32(1.0) / jnp.float32(d)
    mean = s * inv_d
    # Biased variance (unbiased=False).  E[x^2] - E[x]^2 in f32 is accurate
    # for well-scaled inputs; clamp tiny negative fp slop to zero.
    var = jnp.maximum(s2 * inv_d - mean * mean, 0.0)
    inv = jax.lax.rsqrt(var + _EPS)                                  # EUP rsqrt

    norm = (x - mean) * inv
    y = (scale_ref[...].astype(jnp.float32) * norm
         + shift_ref[...].astype(jnp.float32))
    o_ref[...] = y.astype(o_ref.dtype)


def _vmem_budget_bytes():
    """Generation-aware scoped-VMEM budget (never the full physical VMEM)."""
    phys = None
    try:
        info = pltpu.get_tpu_info()
        phys = getattr(info, "vmem_capacity_bytes", None)
    except Exception:
        phys = None
    if not phys:
        phys = 64 << 20            # assume the smallest case (v7x per-TC VMEM)
    # Half of physical, capped at 64 MiB: 32 MiB on v7x, 64 MiB on v5e/v6e,
    # leaving headroom for Mosaic internal scratch.
    return min(phys // 2, 64 << 20)


def _choose_row_tile(M, D, itemsize, vmem_budget):
    """Byte-targeted row tile: ~2 MiB x blocks, VMEM-capped, >= 2 grid steps."""
    sub = max(8, 32 // max(itemsize, 1))    # sublane granularity: 8 f32, 16 bf16
    if M <= sub:
        return M                            # full-extent block is always legal

    target_bytes = 2 << 20                  # ~2 MiB per x block
    tm = max(sub, (target_bytes // (D * itemsize)) // sub * sub)

    # Pipeline footprint per row: 2 double-buffered input blocks + 2 output
    # blocks (x dtype) + ~3 f32-sized temporaries (upcast / centered / scaled).
    per_row = 4 * D * itemsize + 3 * D * 4
    cap = max(sub, (vmem_budget * 3 // 4) // per_row // sub * sub)
    tm = min(tm, cap)

    # Keep at least 2 grid steps so v7x's two TensorCores both get work.
    half = (M // 2) // sub * sub
    if half >= sub:
        tm = min(tm, half)

    # Never larger than M rounded up to a sublane multiple.
    tm = min(tm, pl.cdiv(M, sub) * sub)
    return tm


def layernorm(x, scale, shift):
    """x: (M, D). scale/shift: (D,) or (1, D). Returns (M, D) in x.dtype."""
    M, D = x.shape
    scale2d = scale.reshape(1, D)
    shift2d = shift.reshape(1, D)

    itemsize = jnp.dtype(x.dtype).itemsize
    vmem_budget = _vmem_budget_bytes()
    tm = _choose_row_tile(M, D, itemsize, vmem_budget)
    grid = (pl.cdiv(M, tm),)                # ragged last block is masked

    cost = pl.CostEstimate(
        flops=9 * M * D,                    # 2 MXU row-sums + normalize + affine
        transcendentals=M,                  # one rsqrt per row
        bytes_accessed=2 * M * D * itemsize + 2 * D * jnp.dtype(scale.dtype).itemsize,
    )

    return pl.pallas_call(
        layernorm_kernel,
        out_shape=jax.ShapeDtypeStruct((M, D), x.dtype),
        grid_spec=pltpu.PrefetchScalarGridSpec(
            num_scalar_prefetch=0,
            grid=grid,
            in_specs=[
                pl.BlockSpec((tm, D), lambda i: (i, 0)),   # x row tile
                pl.BlockSpec((1, D), lambda i: (0, 0)),    # scale (resident)
                pl.BlockSpec((1, D), lambda i: (0, 0)),    # shift (resident)
            ],
            out_specs=pl.BlockSpec((tm, D), lambda i: (i, 0)),
        ),
        compiler_params=pltpu.CompilerParams(
            dimension_semantics=("parallel",),
            vmem_limit_bytes=vmem_budget,
        ),
        cost_estimate=cost,
    )(x, scale2d, shift2d)


def _reference(x, scale, shift):
    # Matches the PyTorch forward: mean/var over dim=1 of a 2D x,
    # unbiased=False, eps=1e-5.
    x32 = x.astype(jnp.float32)
    mean = jnp.mean(x32, axis=1, keepdims=True)
    var = jnp.mean((x32 - mean) ** 2, axis=1, keepdims=True)
    norm = (x32 - mean) / jnp.sqrt(var + _EPS)
    return (scale.reshape(1, -1) * norm + shift.reshape(1, -1)).astype(x.dtype)


if __name__ == "__main__":
    batch, emb_dim = 512, 128

    key = jax.random.PRNGKey(0)
    kx, ks, kb = jax.random.split(key, 3)
    x = jax.random.normal(kx, (batch, emb_dim), dtype=jnp.float32)
    # Module initializes scale=ones, shift=zeros; perturb deterministically so
    # the affine part is actually exercised.
    scale = 1.0 + 0.1 * jax.random.normal(ks, (emb_dim,), dtype=jnp.float32)
    shift = 0.1 * jax.random.normal(kb, (emb_dim,), dtype=jnp.float32)

    out = jax.block_until_ready(layernorm(x, scale, shift))
    ref = _reference(x, scale, shift)
    assert out.shape == (batch, emb_dim)
    assert jnp.allclose(out, ref, atol=1e-5, rtol=1e-5), "mismatch vs reference"

    # Ragged batch (not a multiple of the row tile): exercises the cdiv grid
    # with a masked last block instead of shrinking tm to tiny divisors.
    x2 = jax.random.normal(kb, (392, emb_dim), dtype=jnp.float32)
    out2 = jax.block_until_ready(layernorm(x2, scale, shift))
    ref2 = _reference(x2, scale, shift)
    assert jnp.allclose(out2, ref2, atol=1e-5, rtol=1e-5), "mismatch (ragged M)"

    print("KERNEL_OK")
</pallas_src>

<mosaic_0001>
module attributes {stable_mosaic.version = 11 : i64} {
  func.func @layernorm_kernel(%arg0: i32, %arg1: memref<256x128xf32, #tpu.memory_space<vmem>>, %arg2: memref<1x128xf32, #tpu.memory_space<vmem>>, %arg3: memref<1x128xf32, #tpu.memory_space<vmem>>, %arg4: memref<256x128xf32, #tpu.memory_space<vmem>>) attributes {dimension_semantics = [#tpu.dimension_semantics<parallel>], iteration_bounds = array<i64: 2>, scalar_prefetch = 0 : i64, scratch_operands = 0 : i64, tpu.core_type = #tpu.core_type<tc>, window_params = [{transform_indices = @transform_0, window_bounds = array<i64: 256, 128>}, {pipeline_mode = #tpu.pipeline_mode<synchronous>, transform_indices = @transform_1, window_bounds = array<i64: 1, 128>}, {pipeline_mode = #tpu.pipeline_mode<synchronous>, transform_indices = @transform_2, window_bounds = array<i64: 1, 128>}, {transform_indices = @transform_3, window_bounds = array<i64: 256, 128>}]} {
    %c0 = arith.constant 0 : index
    %c0_0 = arith.constant 0 : index
    %0 = vector.load %arg1[%c0, %c0_0] : memref<256x128xf32, #tpu.memory_space<vmem>>, vector<256x128xf32>
    %cst = arith.constant 1.000000e+00 : f32
    %1 = vector.broadcast %cst : f32 to vector<128x1xf32>
    %cst_1 = arith.constant dense<0.000000e+00> : vector<256x1xf32>
    %2 = tpu.matmul %0, %1, %cst_1 {dimension_numbers = #tpu.dot_dimension_numbers<[1], [0], [0], [1], [0, 0, 1, 1], [], []>} : vector<256x128xf32>, vector<128x1xf32>, vector<256x1xf32> -> vector<256x1xf32>
    %3 = arith.mulf %0, %0 : vector<256x128xf32>
    %cst_2 = arith.constant dense<0.000000e+00> : vector<256x1xf32>
    %4 = tpu.matmul %3, %1, %cst_2 {dimension_numbers = #tpu.dot_dimension_numbers<[1], [0], [0], [1], [0, 0, 1, 1], [], []>} : vector<256x128xf32>, vector<128x1xf32>, vector<256x1xf32> -> vector<256x1xf32>
    %cst_3 = arith.constant 1.000000e+00 : f32
    %cst_4 = arith.constant 1.280000e+02 : f32
    %5 = arith.divf %cst_3, %cst_4 : f32
    %6 = vector.broadcast %5 : f32 to vector<256x1xf32>
    %7 = arith.mulf %2, %6 : vector<256x1xf32>
    %8 = vector.broadcast %5 : f32 to vector<256x1xf32>
    %9 = arith.mulf %4, %8 : vector<256x1xf32>
    %10 = arith.mulf %7, %7 : vector<256x1xf32>
    %11 = arith.subf %9, %10 : vector<256x1xf32>
    %cst_5 = arith.constant 0.000000e+00 : f32
    %12 = vector.broadcast %cst_5 : f32 to vector<256x1xf32>
    %13 = arith.maximumf %11, %12 : vector<256x1xf32>
    %cst_6 = arith.constant 9.99999974E-6 : f32
    %14 = vector.broadcast %cst_6 : f32 to vector<256x1xf32>
    %15 = arith.addf %13, %14 : vector<256x1xf32>
    %16 = math.rsqrt %15 : vector<256x1xf32>
    %17 = vector.broadcast %7 : vector<256x1xf32> to vector<256x128xf32>
    %18 = arith.subf %0, %17 : vector<256x128xf32>
    %19 = vector.broadcast %16 : vector<256x1xf32> to vector<256x128xf32>
    %20 = arith.mulf %18, %19 : vector<256x128xf32>
    %c0_7 = arith.constant 0 : index
    %c0_8 = arith.constant 0 : index
    %21 = vector.load %arg2[%c0_7, %c0_8] : memref<1x128xf32, #tpu.memory_space<vmem>>, vector<1x128xf32>
    %22 = vector.broadcast %21 : vector<1x128xf32> to vector<256x128xf32>
    %23 = arith.mulf %22, %20 : vector<256x128xf32>
    %c0_9 = arith.constant 0 : index
    %c0_10 = arith.constant 0 : index
    %24 = vector.load %arg3[%c0_9, %c0_10] : memref<1x128xf32, #tpu.memory_space<vmem>>, vector<1x128xf32>
    %25 = vector.broadcast %24 : vector<1x128xf32> to vector<256x128xf32>
    %26 = arith.addf %23, %25 : vector<256x128xf32>
    %c0_11 = arith.constant 0 : index
    %c0_12 = arith.constant 0 : index
    %27 = vector.load %arg4[%c0_11, %c0_12] : memref<256x128xf32, #tpu.memory_space<vmem>>, vector<256x128xf32>
    tpu.vector_store %arg4[%c0_11, %c0_12], %26 {strides = array<i32>} : memref<256x128xf32, #tpu.memory_space<vmem>>, vector<256x128xf32>,
    return
  }
  func.func @transform_0(%arg0: i32) -> (i32, i32) {
    %c0_i32 = arith.constant 0 : i32
    %c0_i32_0 = arith.constant 0 : i32
    return %arg0, %c0_i32 : i32, i32
  }
  func.func @transform_1(%arg0: i32) -> (i32, i32) {
    %c0_i32 = arith.constant 0 : i32
    %c0_i32_0 = arith.constant 0 : i32
    %c0_i32_1 = arith.constant 0 : i32
    return %c0_i32, %c0_i32_0 : i32, i32
  }
  func.func @transform_2(%arg0: i32) -> (i32, i32) {
    %c0_i32 = arith.constant 0 : i32
    %c0_i32_0 = arith.constant 0 : i32
    %c0_i32_1 = arith.constant 0 : i32
    return %c0_i32, %c0_i32_0 : i32, i32
  }
  func.func @transform_3(%arg0: i32) -> (i32, i32) {
    %c0_i32 = arith.constant 0 : i32
    %c0_i32_0 = arith.constant 0 : i32
    return %arg0, %c0_i32 : i32, i32
  }
}

</mosaic_0001>

<bundles_post_ra>
// kernel: tpu_custom_call.1
= control target key start
LH: loop header
LB: loop body
LE: loop exit
PB: predicated region body
PF: predicated region fallthrough
CT: control target
= control target key end

     0   :  { %8 = vsyncpa [#allocation3], 0  ;;  %s2812_s0 = inlined_call_operand.hbm [shape: f32[512,128], index: 0, kind: input, shape index: {}]   ;;  %s2813_s1 = inlined_call_operand.vmem [shape: f32[1,128], index: 1, kind: input, shape index: {}]   ;;  %s2814_s2 = inlined_call_operand.vmem [shape: f32[1,128], index: 2, kind: input, shape index: {}]   ;;  %s2815_s3 = inlined_call_operand.hbm [shape: f32[512,128], index: 3, kind: output, shape index: {}]  }
   0x1   :  { %10 = vsyncpa [#allocation3 + $0x1], 0 }
   0x2   :  { %11 = vsyncpa [#allocation4], 0 }
   0x3   :  { %13 = vsyncpa [#allocation4 + $0x1], 0  ;;  %s2092_s12 = smov 0   ;;  %s2094_s13 = smov 0  }
   0x4   :  { %s2096_s14 = smov 0   ;;  %s2098_s15 = smov 0  }
   0x5 LB: > { %s2113_s16 = sadd.s32 4294967295, %s2062_s15   ;;  %s1510_s17 = sadd.s32 4294967294, %s2062_s15   ;;  %s2062_s15 = sphi %s2098_s15, %s2834_s15   ;;  %s2058_s14 = sphi %s2096_s14, %s2833_s14   ;;  %s2054_s13 = sphi %s2094_s13, %s2832_s13   ;;  %s2050_s12 = sphi %s2092_s12, %s2831_s12  }
   0x6   : > { %s2117_s18 = sadd.s32 1, %s2062_s15   ;;  %s26_s19 = sadd.s32 1, %s2058_s14 }
   0x7   : > { %s23_s20 = ssub.s32 %s2062_s15, %s2117_s18  ;;  %p33_p0 = scmp.ne.s32.totalorder %s2058_s14, %s2054_s13 }
   0x8   : > { %p24_p1 = scmp.eq.s32.totalorder %s23_s20, 0  ;;  %p34_p2 = scmp.eq.s32.totalorder %s2062_s15, 0 }
   0x9   : > { %p39_p3 = scmp.ne.s32.totalorder %s2054_s13, %s2050_s12  ;;  %p40_p4 = scmp.eq.s32.totalorder %s2113_s16, 0 }
   0xa   : > { %s2129_s21 = scalar_select %p24_p1, %s2058_s14, %s26_s19  }
   0xb   : > { %p2131_p5 = por %p34_p2, %p33_p0  ;;  %p2135_p6 = por %p40_p4, %p39_p3 }
   0xc   : > { %p105_p7 = scmp.eq.s32.totalorder %s2113_s16, 1  ;;  %p111_p8 = scmp.eq.s32.totalorder %s1510_s17, 1 }
   0xd   : > { %p1828_p10 = scmp.lt.s32.totalorder %s2062_s15, 2  ;;  %s137_s26 = sand.u32 1, %s2058_s14  }
   0xe   : > { %p2142_p11 = por %p105_p7, %p33_p0  ;;  %p2146_p12 = por %p111_p8, %p39_p3 }
   0xf   : > { %s1526_s27 = sshll.u32 %s2062_s15, 12  ;;  %s1513_s28 = sshll.u32 %s137_s26, 8 }
  0x10   : > { %s2819_s24 = scalar_select %p2142_p11, 1, 0 }
  0x11   : > { %s2820_s25 = scalar_select %p2146_p12, 1, 0 }
  0x12   : > { %s2155_s4 = scalar_lea.hbm %s2812_s0, %s1526_s27  ;;  %s141_s5 = scalar_lea.vmem [#allocation2], %s1513_s28 }
  0x13   : > { %s148_s6 = sshll.u32 %s141_s5, 4  ;;  %p2159_p13 = pnand %p1828_p10, %p2131_p5  ;;  %s2163_s6 = int_to_ptr.vmem [resolvable:$true] %s148_s6 }
  0x14   : > { %s2165_s8 = scalar_lea.sflag [#allocation3], %s137_s26  ;;  %s1966_s9 = scalar_lea.hbm %s2155_s4, 4096 }
  0x15   : > { %p1967_p0 = scmp.ne.s32.totalorder %s2155_s4, %s1966_s9  ;;  %p1968_p1 = pneg %p2159_p13 }
  0x16   : > { %s1971_s17 = scalar_lea.hbm %s2812_s0, 8192  ;;  %p1972_p4 = scmp.lt.u32.totalorder %s2155_s4, %s2812_s0 }
  0x17   : > { %p1969_p2 = pnand %p1968_p1, %p1967_p0  ;;  %p1973_p5 = scmp.lt.u32.totalorder %s1971_s17, %s1966_s9 }
  0x18   : > { %p1975_p8 = scmp.lt.u32.totalorder %s1966_s9, %s2155_s4 }
  0x19   : > { %p1970_p3 = pneg %p1969_p2  ;;  %p1974_p7 = por %p1973_p5, %p1972_p4 }
  0x1b   : > { %p1976_p10 = por %p1975_p8, %p1974_p7 }
  0x1d   : > { %p1977_p9 = pnand %p1976_p10, %p1970_p3 }
  0x1f   : > { %1980 = shalt.err (!%p1977_p9)
}
  0x20   : > { %s1981_s22 = scalar_lea.vmem %s2163_s6, 4096  ;;  %s2064_s26 = smov [#allocation2]  }
  0x21   : > { %p1982_p0 = scmp.ne.s32.totalorder %s2163_s6, %s1981_s22  ;;  %s1986_s27 = sshll.u32 %s2064_s26, 4  ;;  %s1987_s27 = int_to_ptr.vmem [resolvable:$false] %s1986_s27 }
  0x22   : > { %s1988_s28 = scalar_lea.vmem %s1987_s27, 8192  ;;  %p1989_p11 = scmp.lt.s32.totalorder %s2163_s6, %s1987_s27 }
  0x23   : > { %p1984_p2 = pnand %p1982_p0, %p1968_p1  ;;  %p1990_p4 = scmp.lt.s32.totalorder %s1988_s28, %s1981_s22 }
  0x25   : > { %p1985_p12 = pneg %p1984_p2  ;;  %p1991_p5 = por %p1990_p4, %p1989_p11 }
  0x27   : > { %p1992_p7 = pnand %p1991_p5, %p1985_p12 }
  0x29   : > { %1995 = shalt.err (!%p1992_p7)
}
  0x2a   : > { %s2065_s29 = smov 128   ;;  %s2066_s30 = smov 8  }
  0x2b   : > { %1823 = dma.hbm_to_vmem [thread:$0]  (!%p2159_p13), %s2155_s4, 4096, %s2163_s6, %s2165_s8, %s2065_s29, %s2065_s29, %s2066_s30  }
  0x2c   : > { %p1516_p9 = scmp.ge.s32.totalorder %s2062_s15, 1  ;;  %p156_p1 = scmp.lt.s32.totalorder %s2062_s15, 3 }
  0x2e   : > { %p157_p3 = pnand %p1516_p9, %p156_p1 }
  0x2f   : > { %s2196_s5 = sand.u32 (!%p157_p3), 1, %s2054_s13  }
  0x30   : > { %160 = sbr.rel (%p157_p3) target bundleno = 580 (0x244), region = 32  ;;  %s1517_s9 = sshll.u32 (!%p157_p3), %s2196_s5, 8 }
  0x31   : > { %s163_s10 = scalar_lea.sflag (!%p157_p3), [#allocation3], %s2196_s5  ;;  %s2202_s11 = scalar_lea.vmem (!%p157_p3), [#allocation2], %s1517_s9 }
  0x37   : > { %2041 = dma.done.wait (%p2135_p6), %s163_s10, 4096  }
  0x38   : > { %2043 = vsyncadd (%p2135_p6), %s163_s10, 4294963200  ;;  %v2067_v0 = vmov 1.0|1.0   ;;  %v191_v1 = vld [vmem:[%s2202_s11] sm:$0xff]  ;;  %v192_v3 = vld [vmem:[%s2202_s11 + $0x8] sm:$0xff]  ;;  %s2573_s8 = scalar_lea.vmem [#allocation5], %s1517_s9 }
  0x39   : > { %1784 = vmatprep.subr.bf16.mxu0 %v2067_v0  ;;  %1800 = vmatprep.subr.bf16.mxu1 %v2067_v0  ;;  %v448_v2 = vmul.f32 %v191_v1, %v191_v1  ;;  %v193_v4 = vld [vmem:[%s2202_s11 + $0x10] sm:$0xff]  ;;  %v449_v5 = vmul.f32 %v192_v3, %v192_v3  ;;  %v194_v6 = vld [vmem:[%s2202_s11 + $0x18] sm:$0xff]  ;;  %v195_v9 = vld [vmem:[%s2202_s11 + $0x20] sm:$0xff]  ;;  %s1527_s17 = sshll.u32 %s2113_s16, 12  ;;  %s1437_s19 = sshll.u32 %s2573_s8, 4  ;;  %s2766_s19 = int_to_ptr.vmem [resolvable:$true] %s1437_s19 }
  0x3a   : > { %1785 = vmatpush3.bf16.msra.mxu0 %v2067_v0  ;;  %1801 = vmatpush3.bf16.msra.mxu1 %v2067_v0  ;;  %v450_v7 = vmul.f32 %v193_v4, %v193_v4  ;;  %v451_v8 = vmul.f32 %v194_v6, %v194_v6  ;;  %v452_v10 = vmul.f32 %v195_v9, %v195_v9  ;;  %v196_v11 = vld [vmem:[%s2202_s11 + $0x28] sm:$0xff]  ;;  %v197_v12 = vld [vmem:[%s2202_s11 + $0x30] sm:$0xff]  ;;  %v198_v15 = vld [vmem:[%s2202_s11 + $0x38] sm:$0xff]  ;;  %s2764_s26 = scalar_lea.hbm %s2815_s3, %s1527_s17  ;;  %s1424_s16 = scalar_lea.sflag [#allocation4], %s2196_s5 }
  0x3b   : > { %1786 = vmatprep.subr.bf16.mxu0 %v2067_v0  ;;  %1802 = vmatprep.subr.bf16.mxu1 %v2067_v0  ;;  %v453_v13 = vmul.f32 %v196_v11, %v196_v11  ;;  %v454_v14 = vmul.f32 %v197_v12, %v197_v12  ;;  %v199_v16 = vld [vmem:[%s2202_s11 + $0x40] sm:$0xff]  ;;  %v455_v17 = vmul.f32 %v198_v15, %v198_v15  ;;  %v200_v19 = vld [vmem:[%s2202_s11 + $0x48] sm:$0xff]  ;;  %v201_v21 = vld [vmem:[%s2202_s11 + $0x50] sm:$0xff]  ;;  %s1996_s27 = scalar_lea.vmem %s2766_s19, 4096  ;;  %p2828_p11 = scmp.ne.s32.totalorder %s2819_s24, 0 }
  0x3c   : > { %1656 = vmatprep.mubr.f32.mxu0 %v191_v1  ;;  %1736 = vmatprep.mubr.f32.mxu1 %v448_v2  ;;  %v456_v18 = vmul.f32 %v199_v16, %v199_v16  ;;  %v457_v20 = vmul.f32 %v200_v19, %v200_v19  ;;  %v458_v22 = vmul.f32 %v201_v21, %v201_v21  ;;  %v202_v23 = vld [vmem:[%s2202_s11 + $0x58] sm:$0xff]  ;;  %v203_v25 = vld [vmem:[%s2202_s11 + $0x60] sm:$0xff]  ;;  %v204_v27 = vld [vmem:[%s2202_s11 + $0x68] sm:$0xff]  ;;  %v2068_v1 = vmov 0   ;;  %p1997_p6 = scmp.ne.s32.totalorder %s2766_s19, %s1996_s27  ;;  %s2069_s28 = smov [#allocation5]  }
  0x3d   : > { %v459_v24 = vmul.f32 %v202_v23, %v202_v23  ;;  %v460_v26 = vmul.f32 %v203_v25, %v203_v25  ;;  %v461_v28 = vmul.f32 %v204_v27, %v204_v27  ;;  %v205_v29 = vld [vmem:[%s2202_s11 + $0x70] sm:$0xff]  ;;  %v206_v31 = vld [vmem:[%s2202_s11 + $0x78] sm:$0xff]  ;;  %v207_v33 = vld [vmem:[%s2202_s11 + $0x80] sm:$0xff]  ;;  %1868 = vset.pattern.permute.xlu0 %v2068_v1  ;;  %1869 = vset.pattern.permute.xlu1 %v2068_v1  ;;  %s2000_s29 = sshll.u32 %s2069_s28, 4  ;;  %s2001_s29 = int_to_ptr.vmem [resolvable:$false] %s2000_s29 }
  0x3e   : > { %1787 = vmatpush3.bf16.msra.mxu0 %v2067_v0  ;;  %1803 = vmatpush3.bf16.msra.mxu1 %v2067_v0  ;;  %v462_v30 = vmul.f32 %v205_v29, %v205_v29  ;;  %v463_v32 = vmul.f32 %v206_v31, %v206_v31  ;;  %v464_v34 = vmul.f32 %v207_v33, %v207_v33  ;;  %v208_v35 = vld [vmem:[%s2202_s11 + $0x88] sm:$0xff]  ;;  %v209_v37 = vld [vmem:[%s2202_s11 + $0x90] sm:$0xff]  ;;  %v210_v39 = vld [vmem:[%s2202_s11 + $0x98] sm:$0xff]  ;;  %p1998_p12 = pnand %p1997_p6, %p2828_p11  ;;  %s2002_s30 = scalar_lea.vmem %s2001_s29, 8192 }
  0x3f   : > { %1788 = vmatprep.subr.bf16.mxu0 %v2067_v0  ;;  %1804 = vmatprep.subr.bf16.mxu1 %v2067_v0  ;;  %v465_v36 = vmul.f32 %v208_v35, %v208_v35  ;;  %v466_v38 = vmul.f32 %v209_v37, %v209_v37  ;;  %v467_v40 = vmul.f32 %v210_v39, %v210_v39  ;;  %v211_v41 = vld [vmem:[%s2202_s11 + $0xa0] sm:$0xff]  ;;  %v212_v43 = vld [vmem:[%s2202_s11 + $0xa8] sm:$0xff]  ;;  %v213_v45 = vld [vmem:[%s2202_s11 + $0xb0] sm:$0xff]  ;;  %p2003_p8 = scmp.lt.s32.totalorder %s2766_s19, %s2001_s29  ;;  %p2004_p10 = scmp.lt.s32.totalorder %s2002_s30, %s1996_s27 }
  0x40   : > { %v468_v42 = vmul.f32 %v211_v41, %v211_v41  ;;  %v469_v44 = vmul.f32 %v212_v43, %v212_v43  ;;  %v470_v46 = vmul.f32 %v213_v45, %v213_v45  ;;  %v214_v47 = vld [vmem:[%s2202_s11 + $0xb8] sm:$0xff]  ;;  %v215_v49 = vld [vmem:[%s2202_s11 + $0xc0] sm:$0xff]  ;;  %v216_v51 = vld [vmem:[%s2202_s11 + $0xc8] sm:$0xff]  ;;  %p1999_p13 = pneg %p1998_p12 }
  0x41   : > { %v471_v48 = vmul.f32 %v214_v47, %v214_v47  ;;  %v472_v50 = vmul.f32 %v215_v49, %v215_v49  ;;  %v473_v52 = vmul.f32 %v216_v51, %v216_v51  ;;  %v217_v53 = vld [vmem:[%s2202_s11 + $0xd0] sm:$0xff]  ;;  %v218_v55 = vld [vmem:[%s2202_s11 + $0xd8] sm:$0xff]  ;;  %v219_v57 = vld [vmem:[%s2202_s11 + $0xe0] sm:$0xff]  ;;  %p2005_p0 = por %p2004_p10, %p2003_p8 }
  0x42   : > { %1789 = vmatpush3.bf16.msra.mxu0 %v2067_v0  ;;  %1805 = vmatpush3.bf16.msra.mxu1 %v2067_v0  ;;  %v474_v54 = vmul.f32 %v217_v53, %v217_v53  ;;  %v475_v56 = vmul.f32 %v218_v55, %v218_v55  ;;  %v476_v58 = vmul.f32 %v219_v57, %v219_v57  ;;  %v221_v59 = vld [vmem:[%s2202_s11 + $0xf0] sm:$0xff]  ;;  %v220_v60 = vld [vmem:[%s2202_s11 + $0xe8] sm:$0xff]  ;;  %v222_v62 = vld [vmem:[%s2202_s11 + $0xf8] sm:$0xff] }
  0x43   : > { %1790 = vmatprep.subr.bf16.mxu0 %v2067_v0  ;;  %1806 = vmatprep.subr.bf16.mxu1 %v2067_v0  ;;  %v477_v61 = vmul.f32 %v220_v60, %v220_v60  ;;  %v478_v63 = vmul.f32 %v221_v59, %v221_v59  ;;  %p2006_p2 = pnand %p2005_p0, %p1999_p13 }
  0x46   : > { %1791 = vmatpush3.bf16.msra.mxu0 %v2067_v0  ;;  %1807 = vmatpush3.bf16.msra.mxu1 %v2067_v0 }
  0x47   : > { %1792 = vmatprep.subr.bf16.mxu0 %v2067_v0  ;;  %1808 = vmatprep.subr.bf16.mxu1 %v2067_v0 }
  0x4a   : > { %1793 = vmatpush3.bf16.msra.mxu0 %v2067_v0  ;;  %1809 = vmatpush3.bf16.msra.mxu1 %v2067_v0 }
  0x4b   : > { %1794 = vmatprep.subr.bf16.mxu0 %v2067_v0  ;;  %1810 = vmatprep.subr.bf16.mxu1 %v2067_v0 }
  0x4e   : > { %1795 = vmatpush3.bf16.msra.mxu0 %v2067_v0  ;;  %1811 = vmatpush3.bf16.msra.mxu1 %v2067_v0 }
  0x4f   : > { %1796 = vmatprep.subr.bf16.mxu0 %v2067_v0  ;;  %1812 = vmatprep.subr.bf16.mxu1 %v2067_v0 }
  0x52   : > { %1797 = vmatpush3.bf16.msra.mxu0 %v2067_v0  ;;  %1813 = vmatpush3.bf16.msra.mxu1 %v2067_v0 }
  0x53   : > { %1798 = vmatprep.subr.bf16.mxu0 %v2067_v0  ;;  %1814 = vmatprep.subr.bf16.mxu1 %v2067_v0 }
  0x56   : > { %1799 = vmatpush3.bf16.msra.mxu0 %v2067_v0  ;;  %1815 = vmatpush3.bf16.msra.mxu1 %v2067_v0  ;;  %v479_v0 = vmul.f32 %v222_v62, %v222_v62 }
  0x59   : > { %1657 = vmatmul.mubr.f32.vlgmr.msra.gmra.mrb[0].mxu0 %v192_v3  ;;  %1737 = vmatmul.mubr.f32.vlgmr.msra.gmra.mrb[0].mxu1 %v449_v5 }
  0x5a   : > { %1659 = vmatprep.mubr.f32.mxu0 %v193_v4  ;;  %1739 = vmatprep.mubr.f32.mxu1 %v450_v7 }
  0x5d   : > { %1660 = vmatmul.mubr.f32.gmra.mrb[2].mxu0 %v194_v6  ;;  %1740 = vmatmul.mubr.f32.gmra.mrb[2].mxu1 %v451_v8 }
  0x5e   : > { %1662 = vmatprep.mubr.f32.mxu0 %v195_v9  ;;  %1742 = vmatprep.mubr.f32.mxu1 %v452_v10 }
  0x61   : > { %1663 = vmatmul.mubr.f32.gmra.mrb[4].mxu0 %v196_v11  ;;  %1743 = vmatmul.mubr.f32.gmra.mrb[4].mxu1 %v453_v13 }
  0x62   : > { %1665 = vmatprep.mubr.f32.mxu0 %v197_v12  ;;  %1745 = vmatprep.mubr.f32.mxu1 %v454_v14 }
  0x65   : > { %1666 = vmatmul.mubr.f32.gmra.mrb[6].mxu0 %v198_v15  ;;  %1746 = vmatmul.mubr.f32.gmra.mrb[6].mxu1 %v455_v17 }
  0x66   : > { %1668 = vmatprep.mubr.f32.mxu0 %v199_v16  ;;  %1748 = vmatprep.mubr.f32.mxu1 %v456_v18 }
  0x69   : > { %1669 = vmatmul.mubr.f32.gmra.mrb[8].mxu0 %v200_v19  ;;  %1749 = vmatmul.mubr.f32.gmra.mrb[8].mxu1 %v457_v20 }
  0x6a   : > { %1671 = vmatprep.mubr.f32.mxu0 %v201_v21  ;;  %1751 = vmatprep.mubr.f32.mxu1 %v458_v22 }
  0x6d   : > { %1672 = vmatmul.mubr.f32.gmra.mrb[10].mxu0 %v202_v23  ;;  %1752 = vmatmul.mubr.f32.gmra.mrb[10].mxu1 %v459_v24 }
  0x6e   : > { %1674 = vmatprep.mubr.f32.mxu0 %v203_v25  ;;  %1754 = vmatprep.mubr.f32.mxu1 %v460_v26 }
  0x71   : > { %1675 = vmatmul.mubr.f32.gmra.mrb[12].mxu0 %v204_v27  ;;  %1755 = vmatmul.mubr.f32.gmra.mrb[12].mxu1 %v461_v28 }
  0x72   : > { %1677 = vmatprep.mubr.f32.mxu0 %v205_v29  ;;  %1757 = vmatprep.mubr.f32.mxu1 %v462_v30 }
  0x75   : > { %1678 = vmatmul.mubr.f32.gmra.mrb[14].mxu0 %v206_v31  ;;  %1758 = vmatmul.mubr.f32.gmra.mrb[14].mxu1 %v463_v32 }
  0x76   : > { %1680 = vmatprep.mubr.f32.mxu0 %v207_v33  ;;  %1760 = vmatprep.mubr.f32.mxu1 %v464_v34 }
  0x79   : > { %1681 = vmatmul.mubr.f32.gmra.mrb[16].mxu0 %v208_v35  ;;  %1761 = vmatmul.mubr.f32.gmra.mrb[16].mxu1 %v465_v36 }
  0x7a   : > { %1683 = vmatprep.mubr.f32.mxu0 %v209_v37  ;;  %1763 = vmatprep.mubr.f32.mxu1 %v466_v38 }
  0x7d   : > { %1684 = vmatmul.mubr.f32.gmra.mrb[18].mxu0 %v210_v39  ;;  %1764 = vmatmul.mubr.f32.gmra.mrb[18].mxu1 %v467_v40 }
  0x7e   : > { %1686 = vmatprep.mubr.f32.mxu0 %v211_v41  ;;  %1766 = vmatprep.mubr.f32.mxu1 %v468_v42 }
  0x81   : > { %1687 = vmatmul.mubr.f32.gmra.mrb[20].mxu0 %v212_v43  ;;  %1767 = vmatmul.mubr.f32.gmra.mrb[20].mxu1 %v469_v44 }
  0x82   : > { %1689 = vmatprep.mubr.f32.mxu0 %v213_v45  ;;  %1769 = vmatprep.mubr.f32.mxu1 %v470_v46 }
  0x85   : > { %1690 = vmatmul.mubr.f32.gmra.mrb[22].mxu0 %v214_v47  ;;  %1770 = vmatmul.mubr.f32.gmra.mrb[22].mxu1 %v471_v48 }
  0x86   : > { %1692 = vmatprep.mubr.f32.mxu0 %v215_v49  ;;  %1772 = vmatprep.mubr.f32.mxu1 %v472_v50 }
  0x89   : > { %1693 = vmatmul.mubr.f32.gmra.mrb[24].mxu0 %v216_v51  ;;  %1773 = vmatmul.mubr.f32.gmra.mrb[24].mxu1 %v473_v52 }
  0x8a   : > { %1695 = vmatprep.mubr.f32.mxu0 %v217_v53  ;;  %1775 = vmatprep.mubr.f32.mxu1 %v474_v54 }
  0x8d   : > { %1696 = vmatmul.mubr.f32.gmra.mrb[26].mxu0 %v218_v55  ;;  %1776 = vmatmul.mubr.f32.gmra.mrb[26].mxu1 %v475_v56 }
  0x8e   : > { %1698 = vmatprep.mubr.f32.mxu0 %v219_v57  ;;  %1778 = vmatprep.mubr.f32.mxu1 %v476_v58 }
  0x91   : > { %1699 = vmatmul.mubr.f32.gmra.mrb[28].mxu0 %v220_v60  ;;  %1779 = vmatmul.mubr.f32.gmra.mrb[28].mxu1 %v477_v61 }
  0x92   : > { %1701 = vmatprep.mubr.f32.mxu0 %v221_v59  ;;  %1781 = vmatprep.mubr.f32.mxu1 %v478_v63 }
  0x95   : > { %1702 = vmatmul.mubr.f32.gmra.mrb[30].mxu0 %v222_v62  ;;  %1782 = vmatmul.mubr.f32.gmra.mrb[30].mxu1 %v479_v0 }
 0x12c   : > { %v1658_v2 = vpop.f32.mrb[0].mxu0  ;;  %v1738_v3 = vpop.f32.mrb[0].mxu1 }
 0x12d   : > { %v706_v4 = vmul.f32 0.0078125, %v1658_v2  ;;  %v289_v5 = vpop.f32.mrb[1].mxu0  ;;  %v738_v6 = vmul.f32 0.0078125, %v1738_v3  ;;  %v546_v7 = vpop.f32.mrb[1].mxu1 }
 0x12e   : > { %v705_v8 = vmul.f32 0.0078125, %v289_v5  ;;  %v737_v9 = vmul.f32 0.0078125, %v546_v7 }
 0x12f   : > { %v770_v10 = vmul.f32 %v706_v4, %v706_v4  ;;  %936 = vperm.xlu0 %1868, %v706_v4  }
 0x130   : > { %v769_v11 = vmul.f32 %v705_v8, %v705_v8  ;;  %v1661_v12 = vpop.f32.mrb[2].mxu0  ;;  %v1741_v13 = vpop.f32.mrb[2].mxu1 }
 0x131   : > { %v802_v14 = vsub.f32 %v738_v6, %v770_v10  ;;  %v708_v15 = vmul.f32 0.0078125, %v1661_v12  ;;  %v299_v16 = vpop.f32.mrb[3].mxu0  ;;  %v740_v17 = vmul.f32 0.0078125, %v1741_v13  ;;  %v556_v18 = vpop.f32.mrb[3].mxu1 }
 0x132   : > { %v801_v19 = vsub.f32 %v737_v9, %v769_v11  ;;  %v707_v20 = vmul.f32 0.0078125, %v299_v16  ;;  %v739_v21 = vmul.f32 0.0078125, %v556_v18 }
 0x133   : > { %v772_v22 = vmul.f32 %v708_v15, %v708_v15  ;;  %931 = vperm.xlu0 %1868, %v705_v8   ;;  %946 = vperm.xlu1 %1869, %v708_v15   ;;  %v834_v23 = vmax.f32 %v802_v14, 0.0 }
 0x134   : > { %v833_v24 = vmax.f32 %v801_v19, 0.0  ;;  %v771_v25 = vmul.f32 %v707_v20, %v707_v20  ;;  %v1664_v26 = vpop.f32.mrb[4].mxu0  ;;  %v1744_v27 = vpop.f32.mrb[4].mxu1 }
 0x135   : > { %v804_v28 = vsub.f32 %v740_v17, %v772_v22  ;;  %v710_v29 = vmul.f32 0.0078125, %v1664_v26  ;;  %v309_v30 = vpop.f32.mrb[5].mxu0  ;;  %v742_v31 = vmul.f32 0.0078125, %v1744_v27  ;;  %v566_v32 = vpop.f32.mrb[5].mxu1  ;;  %v866_v38 = vadd.f32 1e-05, %v834_v23 }
 0x136   : > { %v865_v33 = vadd.f32 1e-05, %v833_v24  ;;  %v803_v34 = vsub.f32 %v739_v21, %v771_v25  ;;  %v709_v35 = vmul.f32 0.0078125, %v309_v30  ;;  %v741_v36 = vmul.f32 0.0078125, %v566_v32 }
 0x137   : > { %v774_v37 = vmul.f32 %v710_v29, %v710_v29  ;;  %941 = vperm.xlu1 %1869, %v707_v20   ;;  %v836_v52 = vmax.f32 %v804_v28, 0.0 }
 0x138   : > { %1870 = vrsqrt.f32 %v865_v33  ;;  %v773_v39 = vmul.f32 %v709_v35, %v709_v35  ;;  %951 = vperm.xlu0 %1868, %v709_v35   ;;  %v1667_v40 = vpop.f32.mrb[6].mxu0  ;;  %v1747_v41 = vpop.f32.mrb[6].mxu1  ;;  %v835_v42 = vmax.f32 %v803_v34, 0.0 }
 0x139   : > { %v806_v43 = vsub.f32 %v742_v31, %v774_v37  ;;  %v712_v44 = vmul.f32 0.0078125, %v1667_v40  ;;  %v319_v45 = vpop.f32.mrb[7].mxu0  ;;  %v2240_v46 = vmul.f32 0.0078125, %v1747_v41  ;;  %v576_v47 = vpop.f32.mrb[7].mxu1  ;;  %1872 = vrsqrt.f32 %v866_v38 }
 0x13a   : > { %v711_v48 = vmul.f32 0.0078125, %v319_v45  ;;  %v805_v49 = vsub.f32 %v741_v36, %v773_v39  ;;  %v743_v50 = vmul.f32 0.0078125, %v576_v47  ;;  %v867_v56 = vadd.f32 1e-05, %v835_v42 }
 0x13b   : > { %v2242_v51 = vmul.f32 %v712_v44, %v712_v44  ;;  %956 = vperm.xlu1 %1869, %v710_v29   ;;  %v868_v2 = vadd.f32 1e-05, %v836_v52  ;;  %v838_v17 = vmax.f32 %v806_v43, 0.0 }
 0x13c   : > { %v775_v53 = vmul.f32 %v711_v48, %v711_v48  ;;  %961 = vperm.xlu0 %1868, %v711_v48   ;;  %v1670_v54 = vpop.f32.mrb[8].mxu0  ;;  %v1750_v55 = vpop.f32.mrb[8].mxu1  ;;  %v837_v3 = vmax.f32 %v805_v49, 0.0  ;;  %1874 = vrsqrt.f32 %v867_v56 }
 0x13d   : > { %v808_v57 = vsub.f32 %v2240_v46, %v2242_v51  ;;  %v714_v58 = vmul.f32 0.0078125, %v1670_v54  ;;  %v329_v59 = vpop.f32.mrb[9].mxu0  ;;  %v2246_v60 = vmul.f32 0.0078125, %v1750_v55  ;;  %v586_v61 = vpop.f32.mrb[9].mxu1  ;;  %1876 = vrsqrt.f32 %v868_v2 }
 0x13e   : > { %v713_v62 = vmul.f32 0.0078125, %v329_v59  ;;  %v807_v63 = vsub.f32 %v743_v50, %v775_v53  ;;  %v2248_v0 = vmul.f32 0.0078125, %v586_v61  ;;  %v869_v18 = vadd.f32 1e-05, %v837_v3 }
 0x13f   : > { %v2250_v1 = vmul.f32 %v714_v58, %v714_v58  ;;  %966 = vperm.xlu1 %1869, %v712_v44   ;;  %v870_v32 = vadd.f32 1e-05, %v838_v17  ;;  %v840_v48 = vmax.f32 %v808_v57, 0.0 }
 0x140   : > { %v2252_v4 = vmul.f32 %v713_v62, %v713_v62  ;;  %971 = vperm.xlu0 %1868, %v713_v62   ;;  %v1673_v5 = vpop.f32.mrb[10].mxu0  ;;  %v1753_v6 = vpop.f32.mrb[10].mxu1  ;;  %1878 = vrsqrt.f32 %v869_v18  ;;  %v839_v36 = vmax.f32 %v807_v63, 0.0 }
 0x141   : > { %v810_v7 = vsub.f32 %v2246_v60, %v2250_v1  ;;  %v716_v8 = vmul.f32 0.0078125, %v1673_v5  ;;  %v339_v9 = vpop.f32.mrb[11].mxu0  ;;  %v2256_v10 = vmul.f32 0.0078125, %v1753_v6  ;;  %v596_v11 = vpop.f32.mrb[11].mxu1  ;;  %1880 = vrsqrt.f32 %v870_v32 }
 0x142   : > { %v1871_v12 = vpop.eup %1870  ;;  %v809_v13 = vsub.f32 %v2248_v0, %v2252_v4  ;;  %v715_v14 = vmul.f32 0.0078125, %v339_v9  ;;  %v2260_v15 = vmul.f32 0.0078125, %v596_v11  ;;  %v871_v53 = vadd.f32 1e-05, %v839_v36 }
 0x143   : > { %976 = vperm.xlu1 %1869, %v714_v58   ;;  %v2262_v16 = vmul.f32 %v716_v8, %v716_v8  ;;  %v1873_v27 = vpop.eup %1872  ;;  %v872_v63 = vadd.f32 1e-05, %v840_v48 }
 0x144   : > { %1123 = vperm.xlu0 %1868, %v1871_v12   ;;  %v2264_v19 = vmul.f32 %v715_v14, %v715_v14  ;;  %v1676_v20 = vpop.f32.mrb[12].mxu0  ;;  %v1756_v21 = vpop.f32.mrb[12].mxu1  ;;  %v841_v0 = vmax.f32 %v809_v13, 0.0  ;;  %1882 = vrsqrt.f32 %v871_v53 }
 0x145   : > { %v812_v22 = vsub.f32 %v2256_v10, %v2262_v16  ;;  %v718_v23 = vmul.f32 0.0078125, %v1676_v20  ;;  %v349_v24 = vpop.f32.mrb[13].mxu0  ;;  %v2268_v25 = vmul.f32 0.0078125, %v1756_v21  ;;  %v606_v26 = vpop.f32.mrb[13].mxu1  ;;  %1884 = vrsqrt.f32 %v872_v63 }
 0x146   : > { %v811_v28 = vsub.f32 %v2260_v15, %v2264_v19  ;;  %v717_v29 = vmul.f32 0.0078125, %v349_v24  ;;  %v2272_v30 = vmul.f32 0.0078125, %v606_v26  ;;  %v1875_v45 = vpop.eup %1874  ;;  %v842_v20 = vmax.f32 %v810_v7, 0.0 }
 0x147   : > { %1128 = vperm.xlu1 %1869, %v1873_v27   ;;  %v2274_v31 = vmul.f32 %v718_v23, %v718_v23  ;;  %v1877_v61 = vpop.eup %1876  ;;  %v873_v21 = vadd.f32 1e-05, %v841_v0  ;;  %v844_v19 = vmax.f32 %v812_v22, 0.0 }
 0x148   : > { %981 = vperm.xlu0 %1868, %v715_v14   ;;  %v2276_v33 = vmul.f32 %v717_v29, %v717_v29  ;;  %v1679_v34 = vpop.f32.mrb[14].mxu0  ;;  %v1759_v35 = vpop.f32.mrb[14].mxu1 }
 0x149   : > { %v814_v37 = vsub.f32 %v2268_v25, %v2274_v31  ;;  %v2280_v38 = vmul.f32 0.0078125, %v1679_v34  ;;  %v359_v39 = vpop.f32.mrb[15].mxu0  ;;  %v2282_v40 = vmul.f32 0.0078125, %v1759_v35  ;;  %v616_v41 = vpop.f32.mrb[15].mxu1  ;;  %1886 = vrsqrt.f32 %v873_v21 }
 0x14a   : > { %v813_v42 = vsub.f32 %v2272_v30, %v2276_v33  ;;  %v719_v43 = vmul.f32 0.0078125, %v359_v39  ;;  %v2286_v44 = vmul.f32 0.0078125, %v616_v41  ;;  %v1879_v12 = vpop.eup %1878  ;;  %v874_v41 = vadd.f32 1e-05, %v842_v20 }
 0x14b   : > { %986 = vperm.xlu1 %1869, %v716_v8   ;;  %v2290_v47 = vmul.f32 %v2280_v38, %v2280_v38  ;;  %v1881_v36 = vpop.eup %1880 }
 0x14c   : > { %1133 = vperm.xlu0 %1868, %v1875_v45   ;;  %v2295_v49 = vmul.f32 %v719_v43, %v719_v43  ;;  %v1682_v50 = vpop.f32.mrb[16].mxu0  ;;  %v1762_v52 = vpop.f32.mrb[16].mxu1  ;;  %1888 = vrsqrt.f32 %v874_v41  ;;  %v845_v41 = vmax.f32 %v813_v42, 0.0 }
 0x14d   : > { %v816_v54 = vsub.f32 %v2282_v40, %v2290_v47  ;;  %v2299_v55 = vmul.f32 0.0078125, %v1682_v50  ;;  %v369_v56 = vpop.f32.mrb[17].mxu0  ;;  %v2301_v58 = vmul.f32 0.0078125, %v1762_v52  ;;  %v626_v59 = vpop.f32.mrb[17].mxu1  ;;  %v843_v52 = vmax.f32 %v811_v28, 0.0 }
 0x14e   : > { %v815_v46 = vsub.f32 %v2286_v44, %v2295_v49  ;;  %v2305_v51 = vmul.f32 0.0078125, %v369_v56  ;;  %v2307_v57 = vmul.f32 0.0078125, %v626_v59 }
 0x14f   : > { %1138 = vperm.xlu1 %1869, %v1877_v61   ;;  %v2311_v62 = vmul.f32 %v2299_v55, %v2299_v55  ;;  %v848_v49 = vmax.f32 %v816_v54, 0.0 }
 0x150   : > { %991 = vperm.xlu0 %1868, %v717_v29   ;;  %v2315_v2 = vmul.f32 %v2305_v51, %v2305_v51  ;;  %v1685_v3 = vpop.f32.mrb[18].mxu0  ;;  %v1765_v4 = vpop.f32.mrb[18].mxu1 }
 0x151   : > { %v818_v5 = vsub.f32 %v2301_v58, %v2311_v62  ;;  %v2319_v6 = vmul.f32 0.0078125, %v1685_v3  ;;  %v379_v8 = vpop.f32.mrb[19].mxu0  ;;  %v2321_v9 = vmul.f32 0.0078125, %v1765_v4  ;;  %v636_v11 = vpop.f32.mrb[19].mxu1 }
 0x152   : > { %v817_v13 = vsub.f32 %v2307_v57, %v2315_v2  ;;  %v2325_v14 = vmul.f32 0.0078125, %v379_v8  ;;  %v2327_v17 = vmul.f32 0.0078125, %v636_v11  ;;  %v1883_v4 = vpop.eup %1882 }
 0x153   : > { %996 = vperm.xlu1 %1869, %v718_v23   ;;  %v2331_v18 = vmul.f32 %v2319_v6, %v2319_v6  ;;  %v850_v54 = vmax.f32 %v818_v5, 0.0 }
 0x154   : > { %1143 = vperm.xlu0 %1868, %v1879_v12   ;;  %v2338_v24 = vmul.f32 %v2325_v14, %v2325_v14  ;;  %v1688_v26 = vpop.f32.mrb[20].mxu0  ;;  %v1768_v27 = vpop.f32.mrb[20].mxu1  ;;  %v875_v12 = vadd.f32 1e-05, %v843_v52  ;;  %v849_v40 = vmax.f32 %v817_v13, 0.0 }
 0x155   : > { %v820_v23 = vsub.f32 %v2321_v9, %v2331_v18  ;;  %v2342_v29 = vmul.f32 0.0078125, %v1688_v26  ;;  %v389_v32 = vpop.f32.mrb[21].mxu0  ;;  %v2344_v34 = vmul.f32 0.0078125, %v1768_v27  ;;  %v646_v35 = vpop.f32.mrb[21].mxu1 }
 0x156   : > { %v819_v60 = vsub.f32 %v2327_v17, %v2338_v24  ;;  %v2348_v1 = vmul.f32 0.0078125, %v389_v32  ;;  %v2350_v7 = vmul.f32 0.0078125, %v646_v35  ;;  %v1885_v32 = vpop.eup %1884  ;;  %1890 = vrsqrt.f32 %v875_v12 }
 0x157   : > { %1148 = vperm.xlu1 %1869, %v1881_v36   ;;  %v2354_v39 = vmul.f32 %v2342_v29, %v2342_v29  ;;  %v876_v36 = vadd.f32 1e-05, %v844_v19  ;;  %v1887_v30 = vpop.eup %1886  ;;  %v846_v12 = vmax.f32 %v814_v37, 0.0  ;;  %v852_v58 = vmax.f32 %v820_v23, 0.0 }
 0x158   : > { %1001 = vperm.xlu0 %1868, %v719_v43   ;;  %v2358_v45 = vmul.f32 %v2348_v1, %v2348_v1  ;;  %v1691_v48 = vpop.f32.mrb[22].mxu0  ;;  %v1771_v50 = vpop.f32.mrb[22].mxu1  ;;  %v851_v57 = vmax.f32 %v819_v60, 0.0 }
 0x159   : > { %v822_v53 = vsub.f32 %v2344_v34, %v2354_v39  ;;  %v2365_v56 = vmul.f32 0.0078125, %v1691_v48  ;;  %v399_v59 = vpop.f32.mrb[23].mxu0  ;;  %v2367_v61 = vmul.f32 0.0078125, %v1771_v50  ;;  %v656_v63 = vpop.f32.mrb[23].mxu1  ;;  %1892 = vrsqrt.f32 %v876_v36 }
 0x15a   : > { %v821_v43 = vsub.f32 %v2350_v7, %v2358_v45  ;;  %v2371_v0 = vmul.f32 0.0078125, %v399_v59  ;;  %v2373_v3 = vmul.f32 0.0078125, %v656_v63  ;;  %v1889_v59 = vpop.eup %1888  ;;  %v883_v62 = vadd.f32 1e-05, %v851_v57  ;;  %v2557_v57 = vld [vmem:[%s2813_s1] ss:$0 sm:$0xff] }
 0x15b   : > { %1006 = vperm.xlu1 %1869, %v2280_v38   ;;  %v2378_v15 = vmul.f32 %v2365_v56, %v2365_v56  ;;  %v884_v13 = vadd.f32 1e-05, %v852_v58  ;;  %v854_v9 = vmax.f32 %v822_v53, 0.0 }
 0x15c   : > { %1153 = vperm.xlu0 %1868, %v1883_v4   ;;  %v2385_v28 = vmul.f32 %v2371_v0, %v2371_v0  ;;  %v1694_v8 = vpop.f32.mrb[24].mxu0  ;;  %v1774_v11 = vpop.f32.mrb[24].mxu1  ;;  %v853_v17 = vmax.f32 %v821_v43, 0.0 }
 0x15d   : > { %v2389_v20 = vmul.f32 0.0078125, %v1694_v8  ;;  %v409_v21 = vpop.f32.mrb[25].mxu0  ;;  %v2391_v26 = vmul.f32 0.0078125, %v1774_v11  ;;  %v666_v27 = vpop.f32.mrb[25].mxu1  ;;  %v2823_v34 = vsub.f32 %v2367_v61, %v2378_v15 }
 0x15e   : > { %v2395_v16 = vmul.f32 0.0078125, %v409_v21  ;;  %v2397_v22 = vmul.f32 0.0078125, %v666_v27  ;;  %v877_v21 = vadd.f32 1e-05, %v845_v41  ;;  %v885_v18 = vadd.f32 1e-05, %v853_v17 }
 0x15f   : > { %1158 = vperm.xlu1 %1869, %v1885_v32   ;;  %v2401_v35 = vmul.f32 %v2389_v20, %v2389_v20  ;;  %v2822_v60 = vsub.f32 %v2373_v3, %v2385_v28  ;;  %v856_v39 = vmax.f32 %v2823_v34, 0.0 }
 0x160   : > { %1011 = vperm.xlu0 %1868, %v2305_v51   ;;  %v2409_v48 = vmul.f32 %v2395_v16, %v2395_v16  ;;  %v1697_v50 = vpop.f32.mrb[26].mxu0  ;;  %v1777_v52 = vpop.f32.mrb[26].mxu1  ;;  %1894 = vrsqrt.f32 %v877_v21 }
 0x161   : > { %v2413_v63 = vmul.f32 0.0078125, %v1697_v50  ;;  %v419_v4 = vpop.f32.mrb[27].mxu0  ;;  %v2415_v19 = vmul.f32 0.0078125, %v1777_v52  ;;  %v676_v8 = vpop.f32.mrb[27].mxu1  ;;  %v2825_v3 = vsub.f32 %v2391_v26, %v2401_v35 }
 0x162   : > { %v2419_v42 = vmul.f32 0.0078125, %v419_v4  ;;  %v2421_v51 = vmul.f32 0.0078125, %v676_v8  ;;  %v1891_v10 = vpop.eup %1890  ;;  %v2824_v53 = vsub.f32 %v2397_v22, %v2409_v48 }
 0x163   : > { %1016 = vperm.xlu1 %1869, %v2299_v55   ;;  %v2426_v11 = vmul.f32 %v2413_v63, %v2413_v63  ;;  %v858_v28 = vmax.f32 %v2825_v3, 0.0 }
 0x164   : > { %1163 = vperm.xlu0 %1868, %v1887_v30   ;;  %v2433_v27 = vmul.f32 %v2419_v42, %v2419_v42  ;;  %v1700_v32 = vpop.f32.mrb[28].mxu0  ;;  %v1780_v50 = vpop.f32.mrb[28].mxu1  ;;  %v878_v30 = vadd.f32 1e-05, %v846_v12 }
 0x165   : > { %v2437_v52 = vmul.f32 0.0078125, %v1700_v32  ;;  %v429_v4 = vpop.f32.mrb[29].mxu0  ;;  %v2439_v8 = vmul.f32 0.0078125, %v1780_v50  ;;  %v686_v36 = vpop.f32.mrb[29].mxu1  ;;  %v890_v22 = vadd.f32 1e-05, %v858_v28  ;;  %v2827_v48 = vsub.f32 %v2415_v19, %v2426_v11 }
 0x166   : > { %v2443_v31 = vmul.f32 0.0078125, %v429_v4  ;;  %v2445_v37 = vmul.f32 0.0078125, %v686_v36  ;;  %v847_v4 = vmax.f32 %v815_v46, 0.0  ;;  %1896 = vrsqrt.f32 %v878_v30 }
 0x167   : > { %1168 = vperm.xlu1 %1869, %v1889_v59   ;;  %v2449_v41 = vmul.f32 %v2437_v52, %v2437_v52  ;;  %v2826_v61 = vsub.f32 %v2421_v51, %v2433_v27 }
 0x168   : > { %1021 = vperm.xlu0 %1868, %v2325_v14   ;;  %v2454_v32 = vmul.f32 %v2443_v31, %v2443_v31  ;;  %v1703_v50 = vpop.f32.mrb[30].mxu0  ;;  %v1783_v55 = vpop.f32.mrb[30].mxu1 }
 0x169   : > { %v830_v59 = vsub.f32 %v2439_v8, %v2449_v41  ;;  %v2461_v36 = vmul.f32 0.0078125, %v1703_v50  ;;  %v439_v25 = vpop.f32.mrb[31].mxu0  ;;  %v2463_v12 = vmul.f32 0.0078125, %v1783_v55  ;;  %v696_v21 = vpop.f32.mrb[31].mxu1  ;;  %v879_v55 = vadd.f32 1e-05, %v847_v4 }
 0x16a   : > { %v829_v14 = vsub.f32 %v2445_v37, %v2454_v32  ;;  %v2467_v33 = vmul.f32 0.0078125, %v439_v25  ;;  %v2469_v38 = vmul.f32 0.0078125, %v696_v21  ;;  %v1893_v50 = vpop.eup %1892  ;;  %v880_v21 = vadd.f32 1e-05, %v848_v49 }
 0x16b   : > { %1026 = vperm.xlu1 %1869, %v2319_v6   ;;  %v2474_v44 = vmul.f32 %v2461_v36, %v2461_v36  ;;  %1898 = vrsqrt.f32 %v879_v55  ;;  %v1895_v47 = vpop.eup %1894  ;;  %v882_v4 = vadd.f32 1e-05, %v850_v54  ;;  %v859_v15 = vmax.f32 %v2826_v61, 0.0 }
 0x16c   : > { %1173 = vperm.xlu0 %1868, %v1891_v10   ;;  %v2481_v46 = vmul.f32 %v2467_v33, %v2467_v33  ;;  %1900 = vrsqrt.f32 %v880_v21  ;;  %v881_v10 = vadd.f32 1e-05, %v849_v40  ;;  %v861_v35 = vmax.f32 %v829_v14, 0.0 }
 0x16d   : > { %v832_v25 = vsub.f32 %v2463_v12, %v2474_v44  ;;  %v891_v26 = vadd.f32 1e-05, %v859_v15  ;;  %v862_v19 = vmax.f32 %v830_v59, 0.0  ;;  %v1938_v15 = vld [vmem:[%s2202_s11 + $0x20] sm:$0xff] }
 0x16e   : > { %v831_v6 = vsub.f32 %v2469_v38, %v2481_v46  ;;  %1902 = vrsqrt.f32 %v881_v10  ;;  %v893_v11 = vadd.f32 1e-05, %v861_v35  ;;  %v1934_v10 = vld [vmem:[%s2202_s11] sm:$0xff]  ;;  %v1939_v35 = vld [vmem:[%s2202_s11 + $0x28] sm:$0xff] }
 0x16f   : > { %1178 = vperm.xlu1 %1869, %v1893_v50   ;;  %1904 = vrsqrt.f32 %v882_v4  ;;  %v894_v37 = vadd.f32 1e-05, %v862_v19  ;;  %v864_v38 = vmax.f32 %v832_v25, 0.0 }
 0x170   : > { %1031 = vperm.xlu0 %1868, %v2348_v1   ;;  %v1897_v30 = vpop.eup %1896  ;;  %1906 = vrsqrt.f32 %v883_v62  ;;  %v855_v1 = vmax.f32 %v2822_v60, 0.0  ;;  %v863_v51 = vmax.f32 %v831_v6, 0.0  ;;  %v1935_v62 = vld [vmem:[%s2202_s11 + $0x8] sm:$0xff]  ;;  %v1936_v60 = vld [vmem:[%s2202_s11 + $0x10] sm:$0xff] }
 0x171   : > { %1908 = vrsqrt.f32 %v884_v13  ;;  %v2563_v13 = vld [vmem:[%s2814_s2] ss:$0 sm:$0xff] }
 0x172   : > { %1910 = vrsqrt.f32 %v885_v18  ;;  %v887_v45 = vadd.f32 1e-05, %v855_v1 }
 0x173   : > { %1036 = vperm.xlu1 %1869, %v2342_v29   ;;  %v886_v29 = vadd.f32 1e-05, %v854_v9 }
 0x174   : > { %1183 = vperm.xlu0 %1868, %v1895_v47  }
 0x175   : > { %v1899_v2 = vpop.eup %1898  ;;  %1912 = vrsqrt.f32 %v886_v29 }
 0x176   : > { %v1901_v5 = vpop.eup %1900  ;;  %1914 = vrsqrt.f32 %v887_v45 }
 0x177   : > { %1188 = vperm.xlu1 %1869, %v1897_v30  }
 0x178   : > { %1041 = vperm.xlu0 %1868, %v2371_v0   ;;  %v1903_v24 = vpop.eup %1902  ;;  %v888_v0 = vadd.f32 1e-05, %v856_v39 }
 0x179   : > { %v1905_v23 = vpop.eup %1904 }
 0x17a   : > { %v1907_v7 = vpop.eup %1906  ;;  %1916 = vrsqrt.f32 %v888_v0 }
 0x17b   : > { %1046 = vperm.xlu1 %1869, %v2365_v56   ;;  %v857_v56 = vmax.f32 %v2824_v53, 0.0  ;;  %v1909_v43 = vpop.eup %1908  ;;  %v1937_v53 = vld [vmem:[%s2202_s11 + $0x18] sm:$0xff] }
 0x17c   : > { %1193 = vperm.xlu0 %1868, %v1899_v2  }
 0x17f   : > { %1198 = vperm.xlu1 %1869, %v1901_v5  }
 0x180   : > { %1051 = vperm.xlu0 %1868, %v2395_v16   ;;  %v1911_v16 = vpop.eup %1910 }
 0x183   : > { %1056 = vperm.xlu1 %1869, %v2389_v20   ;;  %v889_v20 = vadd.f32 1e-05, %v857_v56 }
 0x184   : > { %1203 = vperm.xlu0 %1868, %v1903_v24  }
 0x185   : > { %1918 = vrsqrt.f32 %v889_v20 }
 0x186   : > { %1920 = vrsqrt.f32 %v890_v22 }
 0x187   : > { %1208 = vperm.xlu1 %1869, %v1905_v23   ;;  %1922 = vrsqrt.f32 %v891_v26 }
 0x188   : > { %1061 = vperm.xlu0 %1868, %v2419_v42   ;;  %v1913_v42 = vpop.eup %1912 }
 0x18b   : > { %1066 = vperm.xlu1 %1869, %v2413_v63   ;;  %v860_v63 = vmax.f32 %v2827_v48, 0.0 }
 0x18c   : > { %1213 = vperm.xlu0 %1868, %v1907_v7  }
 0x18d   : > { %v892_v27 = vadd.f32 1e-05, %v860_v63 }
 0x18f   : > { %1218 = vperm.xlu1 %1869, %v1909_v43   ;;  %1924 = vrsqrt.f32 %v892_v27 }
 0x190   : > { %1071 = vperm.xlu0 %1868, %v2443_v31   ;;  %v895_v31 = vadd.f32 1e-05, %v863_v51  ;;  %1926 = vrsqrt.f32 %v893_v11 }
 0x192   : > { %1928 = vrsqrt.f32 %v895_v31 }
 0x193   : > { %1076 = vperm.xlu1 %1869, %v2437_v52   ;;  %v1915_v52 = vpop.eup %1914  ;;  %1930 = vrsqrt.f32 %v894_v37  ;;  %v1940_v37 = vld [vmem:[%s2202_s11 + $0x30] sm:$0xff] }
 0x194   : > { %1223 = vperm.xlu0 %1868, %v1911_v16   ;;  %v1917_v32 = vpop.eup %1916 }
 0x195   : > { %v1919_v14 = vpop.eup %1918 }
 0x196   : > { %v1921_v8 = vpop.eup %1920 }
 0x197   : > { %1228 = vperm.xlu1 %1869, %v1913_v42   ;;  %v1923_v41 = vpop.eup %1922 }
 0x198   : > { %1081 = vperm.xlu0 %1868, %v2467_v33   ;;  %v896_v33 = vadd.f32 1e-05, %v864_v38 }
 0x199   : > { %v1925_v59 = vpop.eup %1924 }
 0x19a   : > { %1932 = vrsqrt.f32 %v896_v33 }
 0x19b   : > { %1086 = vperm.xlu1 %1869, %v2461_v36   ;;  %v1927_v36 = vpop.eup %1926 }
 0x19c   : > { %1233 = vperm.xlu0 %1868, %v1915_v52   ;;  %v1929_v12 = vpop.eup %1928 }
 0x19d   : > { %v1931_v44 = vpop.eup %1930 }
 0x19f   : > { %1238 = vperm.xlu1 %1869, %v1917_v32  }
 0x1a0   : > { %1243 = vperm.xlu0 %1868, %v1919_v14  }
 0x1a3   : > { %1248 = vperm.xlu1 %1869, %v1921_v8  }
 0x1a4   : > { %1253 = vperm.xlu0 %1868, %v1923_v41   ;;  %v1933_v49 = vpop.eup %1932  ;;  %v1941_v41 = vld [vmem:[%s2202_s11 + $0x38] sm:$0xff] }
 0x1a7   : > { %1258 = vperm.xlu1 %1869, %v1925_v59  }
 0x1a8   : > { %1263 = vperm.xlu0 %1868, %v1927_v36  }
 0x1ab   : > { %1268 = vperm.xlu1 %1869, %v1931_v44  }
 0x1ac   : > { %1273 = vperm.xlu0 %1868, %v1929_v12  }
 0x1ae   : > { %v937_v46 = vpop.permute.xlu0 %936 }
 0x1af   : > { %1278 = vperm.xlu1 %1869, %v1933_v49   ;;  %v1090_v5 = vsub.f32 %v1935_v62, %v937_v46 }
 0x1b2   : > { %v932_v55 = vpop.permute.xlu0 %931  ;;  %v947_v25 = vpop.permute.xlu1 %946 }
 0x1b3   : > { %v1089_v30 = vsub.f32 %v1934_v10, %v932_v55  ;;  %v1092_v56 = vsub.f32 %v1937_v53, %v947_v25  ;;  %v1942_v25 = vld [vmem:[%s2202_s11 + $0x40] sm:$0xff]  ;;  %v1943_v10 = vld [vmem:[%s2202_s11 + $0x48] sm:$0xff] }
 0x1b6   : > { %v942_v50 = vpop.permute.xlu1 %941 }
 0x1b7   : > { %v952_v6 = vpop.permute.xlu0 %951  ;;  %v1091_v1 = vsub.f32 %v1936_v60, %v942_v50 }
 0x1b8   : > { %v1093_v16 = vsub.f32 %v1938_v15, %v952_v6 }
 0x1ba   : > { %v957_v21 = vpop.permute.xlu1 %956 }
 0x1bb   : > { %v962_v40 = vpop.permute.xlu0 %961  ;;  %v1094_v42 = vsub.f32 %v1939_v35, %v957_v21 }
 0x1bc   : > { %v1095_v38 = vsub.f32 %v1940_v37, %v962_v40 }
 0x1be   : > { %v2547_v47 = vpop.permute.xlu1 %966 }
 0x1bf   : > { %v2549_v54 = vpop.permute.xlu0 %971  ;;  %v1096_v59 = vsub.f32 %v1941_v41, %v2547_v47 }
 0x1c0   : > { %v1097_v50 = vsub.f32 %v1942_v25, %v2549_v54 }
 0x1c2   : > { %v2552_v4 = vpop.permute.xlu1 %976 }
 0x1c3   : > { %v1124_v2 = vpop.permute.xlu0 %1123 }
 0x1c4   : > { %v1281_v58 = vmul.f32 %v1124_v2, %v1089_v30  ;;  %v1098_v30 = vsub.f32 %v1943_v10, %v2552_v4 }
 0x1c6   : > { %v1320_v17 = vmul.f32 %v2557_v57, %v1281_v58  ;;  %v1129_v24 = vpop.permute.xlu1 %1128 }
 0x1c7   : > { %v1282_v9 = vmul.f32 %v1129_v24, %v1090_v5  ;;  %v2566_v18 = vpop.permute.xlu0 %981  ;;  %v1944_v24 = vld [vmem:[%s2202_s11 + $0x50] sm:$0xff] }
 0x1c8   : > { %v1359_v23 = vadd.f32 %v2563_v13, %v1320_v17 }
 0x1c9   : > { %v1321_v29 = vmul.f32 %v2557_v57, %v1282_v9  ;;  %v1099_v9 = vsub.f32 %v1944_v24, %v2566_v18 }
 0x1ca   : > { %1391 = vst [vmem:[%s2573_s8] sm:$0xff] %v1359_v23  ;;  %v2576_v7 = vpop.permute.xlu1 %986 }
 0x1cb   : > { %v1360_v34 = vadd.f32 %v2563_v13, %v1321_v29  ;;  %v1134_v39 = vpop.permute.xlu0 %1133 }
 0x1cc   : > { %v1283_v45 = vmul.f32 %v1134_v39, %v1091_v1  ;;  %v1945_v1 = vld [vmem:[%s2202_s11 + $0x58] sm:$0xff] }
 0x1cd   : > { %1392 = vst [vmem:[%s2573_s8 + $0x8] sm:$0xff] %v1360_v34  ;;  %v1100_v34 = vsub.f32 %v1945_v1, %v2576_v7 }
 0x1ce   : > { %v1322_v43 = vmul.f32 %v2557_v57, %v1283_v45  ;;  %v1139_v0 = vpop.permute.xlu1 %1138 }
 0x1cf   : > { %v1284_v3 = vmul.f32 %v1139_v0, %v1092_v56  ;;  %v2582_v28 = vpop.permute.xlu0 %991  ;;  %v1946_v0 = vld [vmem:[%s2202_s11 + $0x60] sm:$0xff] }
 0x1d0   : > { %v1361_v20 = vadd.f32 %v2563_v13, %v1322_v43 }
 0x1d1   : > { %v1323_v61 = vmul.f32 %v2557_v57, %v1284_v3  ;;  %v1101_v3 = vsub.f32 %v1946_v0, %v2582_v28 }
 0x1d2   : > { %1393 = vst [vmem:[%s2573_s8 + $0x10] sm:$0xff] %v1361_v20  ;;  %v2588_v22 = vpop.permute.xlu1 %996 }
 0x1d3   : > { %v1362_v48 = vadd.f32 %v2563_v13, %v1323_v61  ;;  %v1144_v63 = vpop.permute.xlu0 %1143 }
 0x1d4   : > { %v1285_v26 = vmul.f32 %v1144_v63, %v1093_v16  ;;  %v1947_v16 = vld [vmem:[%s2202_s11 + $0x68] sm:$0xff] }
 0x1d5   : > { %1394 = vst [vmem:[%s2573_s8 + $0x18] sm:$0xff] %v1362_v48  ;;  %v1102_v48 = vsub.f32 %v1947_v16, %v2588_v22 }
 0x1d6   : > { %v1324_v51 = vmul.f32 %v2557_v57, %v1285_v26  ;;  %v1149_v27 = vpop.permute.xlu1 %1148 }
 0x1d7   : > { %v1286_v19 = vmul.f32 %v1149_v27, %v1094_v42  ;;  %v2594_v11 = vpop.permute.xlu0 %1001  ;;  %v1948_v27 = vld [vmem:[%s2202_s11 + $0x70] sm:$0xff] }
 0x1d8   : > { %v1363_v52 = vadd.f32 %v2563_v13, %v1324_v51 }
 0x1d9   : > { %v1325_v31 = vmul.f32 %v2557_v57, %v1286_v19  ;;  %v1103_v19 = vsub.f32 %v1948_v27, %v2594_v11 }
 0x1da   : > { %1395 = vst [vmem:[%s2573_s8 + $0x20] sm:$0xff] %v1363_v52  ;;  %v2600_v32 = vpop.permute.xlu1 %1006 }
 0x1db   : > { %v1364_v14 = vadd.f32 %v2563_v13, %v1325_v31  ;;  %v1154_v33 = vpop.permute.xlu0 %1153 }
 0x1dc   : > { %v1287_v8 = vmul.f32 %v1154_v33, %v1095_v38  ;;  %v1949_v38 = vld [vmem:[%s2202_s11 + $0x78] sm:$0xff] }
 0x1dd   : > { %1396 = vst [vmem:[%s2573_s8 + $0x28] sm:$0xff] %v1364_v14  ;;  %v1104_v14 = vsub.f32 %v1949_v38, %v2600_v32 }
 0x1de   : > { %v1326_v36 = vmul.f32 %v2557_v57, %v1287_v8  ;;  %v1159_v12 = vpop.permute.xlu1 %1158 }
 0x1df   : > { %v1288_v44 = vmul.f32 %v1159_v12, %v1096_v59  ;;  %v2607_v49 = vpop.permute.xlu0 %1011  ;;  %v1950_v12 = vld [vmem:[%s2202_s11 + $0x80] sm:$0xff] }
 0x1e0   : > { %v1365_v46 = vadd.f32 %v2563_v13, %v1326_v36 }
 0x1e1   : > { %v1327_v55 = vmul.f32 %v2557_v57, %v1288_v44  ;;  %v1105_v44 = vsub.f32 %v1950_v12, %v2607_v49  ;;  %v1960_v12 = vld [vmem:[%s2202_s11 + $0xd0] sm:$0xff] }
 0x1e2   : > { %1397 = vst [vmem:[%s2573_s8 + $0x30] sm:$0xff] %v1365_v46  ;;  %v2614_v6 = vpop.permute.xlu1 %1016 }
 0x1e3   : > { %v1366_v21 = vadd.f32 %v2563_v13, %v1327_v55  ;;  %v1164_v40 = vpop.permute.xlu0 %1163 }
 0x1e4   : > { %v1289_v47 = vmul.f32 %v1164_v40, %v1097_v50  ;;  %v1951_v50 = vld [vmem:[%s2202_s11 + $0x88] sm:$0xff] }
 0x1e5   : > { %1398 = vst [vmem:[%s2573_s8 + $0x38] sm:$0xff] %v1366_v21  ;;  %v1106_v21 = vsub.f32 %v1951_v50, %v2614_v6 }
 0x1e6   : > { %v1328_v2 = vmul.f32 %v2557_v57, %v1289_v47  ;;  %v1169_v58 = vpop.permute.xlu1 %1168 }
 0x1e7   : > { %v1290_v62 = vmul.f32 %v1169_v58, %v1098_v30  ;;  %v2621_v5 = vpop.permute.xlu0 %1021  ;;  %v1952_v58 = vld [vmem:[%s2202_s11 + $0x90] sm:$0xff] }
 0x1e8   : > { %v1367_v54 = vadd.f32 %v2563_v13, %v1328_v2 }
 0x1e9   : > { %v1329_v17 = vmul.f32 %v2557_v57, %v1290_v62  ;;  %v1107_v62 = vsub.f32 %v1952_v58, %v2621_v5 }
 0x1ea   : > { %1399 = vst [vmem:[%s2573_s8 + $0x40] sm:$0xff] %v1367_v54  ;;  %v2628_v23 = vpop.permute.xlu1 %1026 }
 0x1eb   : > { %v1368_v4 = vadd.f32 %v2563_v13, %v1329_v17  ;;  %v1174_v29 = vpop.permute.xlu0 %1173 }
 0x1ec   : > { %v1291_v60 = vmul.f32 %v1174_v29, %v1099_v9  ;;  %v1953_v9 = vld [vmem:[%s2202_s11 + $0x98] sm:$0xff] }
 0x1ed   : > { %1400 = vst [vmem:[%s2573_s8 + $0x48] sm:$0xff] %v1368_v4  ;;  %v1108_v4 = vsub.f32 %v1953_v9, %v2628_v23  ;;  %v1963_v9 = vld [vmem:[%s2202_s11 + $0xe8] sm:$0xff] }
 0x1ee   : > { %v1330_v39 = vmul.f32 %v2557_v57, %v1291_v60  ;;  %v1179_v45 = vpop.permute.xlu1 %1178 }
 0x1ef   : > { %v1292_v53 = vmul.f32 %v1179_v45, %v1100_v34  ;;  %v2635_v56 = vpop.permute.xlu0 %1031  ;;  %v1954_v45 = vld [vmem:[%s2202_s11 + $0xa0] sm:$0xff] }
 0x1f0   : > { %v1369_v18 = vadd.f32 %v2563_v13, %v1330_v39 }
 0x1f1   : > { %v1331_v43 = vmul.f32 %v2557_v57, %v1292_v53  ;;  %v1109_v53 = vsub.f32 %v1954_v45, %v2635_v56 }
 0x1f2   : > { %1401 = vst [vmem:[%s2573_s8 + $0x50] sm:$0xff] %v1369_v18  ;;  %v2642_v20 = vpop.permute.xlu1 %1036 }
 0x1f3   : > { %v1370_v7 = vadd.f32 %v2563_v13, %v1331_v43  ;;  %v1184_v61 = vpop.permute.xlu0 %1183 }
 0x1f4   : > { %v1293_v15 = vmul.f32 %v1184_v61, %v1101_v3  ;;  %v1955_v3 = vld [vmem:[%s2202_s11 + $0xa8] sm:$0xff] }
 0x1f5   : > { %1402 = vst [vmem:[%s2573_s8 + $0x58] sm:$0xff] %v1370_v7  ;;  %v1110_v7 = vsub.f32 %v1955_v3, %v2642_v20 }
 0x1f6   : > { %v1332_v63 = vmul.f32 %v2557_v57, %v1293_v15  ;;  %v1189_v26 = vpop.permute.xlu1 %1188 }
 0x1f7   : > { %v1294_v35 = vmul.f32 %v1189_v26, %v1102_v48  ;;  %v2649_v42 = vpop.permute.xlu0 %1041  ;;  %v1956_v26 = vld [vmem:[%s2202_s11 + $0xb0] sm:$0xff] }
 0x1f8   : > { %v1371_v28 = vadd.f32 %v2563_v13, %v1332_v63 }
 0x1f9   : > { %v1333_v51 = vmul.f32 %v2557_v57, %v1294_v35  ;;  %v1111_v35 = vsub.f32 %v1956_v26, %v2649_v42 }
 0x1fa   : > { %1403 = vst [vmem:[%s2573_s8 + $0x60] sm:$0xff] %v1371_v28  ;;  %v2656_v52 = vpop.permute.xlu1 %1046 }
 0x1fb   : > { %v1372_v22 = vadd.f32 %v2563_v13, %v1333_v51  ;;  %v1194_v31 = vpop.permute.xlu0 %1193 }
 0x1fc   : > { %v1295_v37 = vmul.f32 %v1194_v31, %v1103_v19  ;;  %v1957_v19 = vld [vmem:[%s2202_s11 + $0xb8] sm:$0xff]  ;;  %v1958_v31 = vld [vmem:[%s2202_s11 + $0xc0] sm:$0xff] }
 0x1fd   : > { %1404 = vst [vmem:[%s2573_s8 + $0x68] sm:$0xff] %v1372_v22  ;;  %v1112_v22 = vsub.f32 %v1957_v19, %v2656_v52 }
 0x1fe   : > { %v1334_v33 = vmul.f32 %v2557_v57, %v1295_v37  ;;  %v1199_v8 = vpop.permute.xlu1 %1198 }
 0x1ff   : > { %v1296_v41 = vmul.f32 %v1199_v8, %v1104_v14  ;;  %v2663_v59 = vpop.permute.xlu0 %1051 }
 0x200   : > { %v1373_v11 = vadd.f32 %v2563_v13, %v1334_v33  ;;  %v1113_v37 = vsub.f32 %v1958_v31, %v2663_v59 }
 0x201   : > { %v1335_v36 = vmul.f32 %v2557_v57, %v1296_v41 }
 0x202   : > { %1405 = vst [vmem:[%s2573_s8 + $0x70] sm:$0xff] %v1373_v11  ;;  %v2670_v46 = vpop.permute.xlu1 %1056  ;;  %v1959_v11 = vld [vmem:[%s2202_s11 + $0xc8] sm:$0xff] }
 0x203   : > { %v1374_v32 = vadd.f32 %v2563_v13, %v1335_v36  ;;  %v1204_v55 = vpop.permute.xlu0 %1203  ;;  %v1114_v36 = vsub.f32 %v1959_v11, %v2670_v46  ;;  %v1961_v46 = vld [vmem:[%s2202_s11 + $0xd8] sm:$0xff] }
 0x204   : > { %v1297_v25 = vmul.f32 %v1204_v55, %v1105_v44 }
 0x205   : > { %1406 = vst [vmem:[%s2573_s8 + $0x78] sm:$0xff] %v1374_v32 }
 0x206   : > { %v1336_v40 = vmul.f32 %v2557_v57, %v1297_v25  ;;  %v1209_v47 = vpop.permute.xlu1 %1208 }
 0x207   : > { %v1298_v10 = vmul.f32 %v1209_v47, %v1106_v21  ;;  %v2677_v30 = vpop.permute.xlu0 %1061 }
 0x208   : > { %v1375_v49 = vadd.f32 %v2563_v13, %v1336_v40  ;;  %v1115_v59 = vsub.f32 %v1960_v12, %v2677_v30  ;;  %v1962_v30 = vld [vmem:[%s2202_s11 + $0xe0] sm:$0xff] }
 0x209   : > { %v1337_v2 = vmul.f32 %v2557_v57, %v1298_v10 }
 0x20a   : > { %1407 = vst [vmem:[%s2573_s8 + $0x80] sm:$0xff] %v1375_v49  ;;  %v2684_v54 = vpop.permute.xlu1 %1066 }
 0x20b   : > { %v1376_v6 = vadd.f32 %v2563_v13, %v1337_v2  ;;  %v1214_v17 = vpop.permute.xlu0 %1213  ;;  %v1116_v47 = vsub.f32 %v1961_v46, %v2684_v54 }
 0x20c   : > { %v1299_v24 = vmul.f32 %v1214_v17, %v1107_v62 }
 0x20d   : > { %1408 = vst [vmem:[%s2573_s8 + $0x88] sm:$0xff] %v1376_v6 }
 0x20e   : > { %v1338_v29 = vmul.f32 %v2557_v57, %v1299_v24  ;;  %v1219_v60 = vpop.permute.xlu1 %1218 }
 0x20f   : > { %v1300_v1 = vmul.f32 %v1219_v60, %v1108_v4  ;;  %v2691_v34 = vpop.permute.xlu0 %1071  ;;  %v1964_v60 = vld [vmem:[%s2202_s11 + $0xf0] sm:$0xff] }
 0x210   : > { %v1377_v5 = vadd.f32 %v2563_v13, %v1338_v29  ;;  %v1117_v49 = vsub.f32 %v1962_v30, %v2691_v34 }
 0x211   : > { %v1339_v39 = vmul.f32 %v2557_v57, %v1300_v1 }
 0x212   : > { %1409 = vst [vmem:[%s2573_s8 + $0x90] sm:$0xff] %v1377_v5  ;;  %v2698_v18 = vpop.permute.xlu1 %1076 }
 0x213   : > { %v1378_v23 = vadd.f32 %v2563_v13, %v1339_v39  ;;  %v1224_v43 = vpop.permute.xlu0 %1223  ;;  %v1118_v4 = vsub.f32 %v1963_v9, %v2698_v18 }
 0x214   : > { %v1301_v0 = vmul.f32 %v1224_v43, %v1109_v53  ;;  %v1965_v43 = vld [vmem:[%s2202_s11 + $0xf8] sm:$0xff] }
 0x215   : > { %1410 = vst [vmem:[%s2573_s8 + $0x98] sm:$0xff] %v1378_v23 }
 0x216   : > { %v1340_v61 = vmul.f32 %v2557_v57, %v1301_v0  ;;  %v1229_v15 = vpop.permute.xlu1 %1228 }
 0x217   : > { %v1302_v16 = vmul.f32 %v1229_v15, %v1110_v7  ;;  %v1082_v56 = vpop.permute.xlu0 %1081 }
 0x218   : > { %v1379_v48 = vadd.f32 %v2563_v13, %v1340_v61  ;;  %v1119_v1 = vsub.f32 %v1964_v60, %v1082_v56 }
 0x219   : > { %v1341_v63 = vmul.f32 %v2557_v57, %v1302_v16 }
 0x21a   : > { %1411 = vst [vmem:[%s2573_s8 + $0xa0] sm:$0xff] %v1379_v48  ;;  %v2710_v28 = vpop.permute.xlu1 %1086 }
 0x21b   : > { %v1380_v20 = vadd.f32 %v2563_v13, %v1341_v63  ;;  %v1234_v51 = vpop.permute.xlu0 %1233  ;;  %v1120_v0 = vsub.f32 %v1965_v43, %v2710_v28 }
 0x21c   : > { %v1303_v27 = vmul.f32 %v1234_v51, %v1111_v35 }
 0x21d   : > { %1412 = vst [vmem:[%s2573_s8 + $0xa8] sm:$0xff] %v1380_v20 }
 0x21e   : > { %v1342_v38 = vmul.f32 %v2557_v57, %v1303_v27  ;;  %v1239_v42 = vpop.permute.xlu1 %1238 }
 0x21f   : > { %v1304_v14 = vmul.f32 %v1239_v42, %v1112_v22  ;;  %v1244_v33 = vpop.permute.xlu0 %1243 }
 0x220   : > { %v1381_v8 = vadd.f32 %v2563_v13, %v1342_v38  ;;  %v1305_v41 = vmul.f32 %v1244_v33, %v1113_v37 }
 0x221   : > { %v1343_v52 = vmul.f32 %v2557_v57, %v1304_v14 }
 0x222   : > { %1413 = vst [vmem:[%s2573_s8 + $0xb0] sm:$0xff] %v1381_v8  ;;  %v1344_v44 = vmul.f32 %v2557_v57, %v1305_v41  ;;  %v1249_v32 = vpop.permute.xlu1 %1248 }
 0x223   : > { %v1382_v55 = vadd.f32 %v2563_v13, %v1343_v52  ;;  %v1306_v25 = vmul.f32 %v1249_v32, %v1114_v36  ;;  %v1254_v50 = vpop.permute.xlu0 %1253 }
 0x224   : > { %v1383_v21 = vadd.f32 %v2563_v13, %v1344_v44  ;;  %v1307_v40 = vmul.f32 %v1254_v50, %v1115_v59 }
 0x225   : > { %1414 = vst [vmem:[%s2573_s8 + $0xb8] sm:$0xff] %v1382_v55  ;;  %v1345_v10 = vmul.f32 %v2557_v57, %v1306_v25 }
 0x226   : > { %1415 = vst [vmem:[%s2573_s8 + $0xc0] sm:$0xff] %v1383_v21  ;;  %v1346_v2 = vmul.f32 %v2557_v57, %v1307_v40  ;;  %v1259_v58 = vpop.permute.xlu1 %1258 }
 0x227   : > { %v1384_v62 = vadd.f32 %v2563_v13, %v1345_v10  ;;  %v1308_v6 = vmul.f32 %v1259_v58, %v1116_v47  ;;  %v1264_v17 = vpop.permute.xlu0 %1263 }
 0x228   : > { %v1385_v24 = vadd.f32 %v2563_v13, %v1346_v2  ;;  %v1309_v54 = vmul.f32 %v1264_v17, %v1117_v49 }
 0x229   : > { %1416 = vst [vmem:[%s2573_s8 + $0xc8] sm:$0xff] %v1384_v62  ;;  %v1347_v29 = vmul.f32 %v2557_v57, %v1308_v6 }
 0x22a   : > { %1417 = vst [vmem:[%s2573_s8 + $0xd0] sm:$0xff] %v1385_v24  ;;  %v1348_v34 = vmul.f32 %v2557_v57, %v1309_v54  ;;  %v1269_v5 = vpop.permute.xlu1 %1268 }
 0x22b   : > { %v1386_v39 = vadd.f32 %v2563_v13, %v1347_v29  ;;  %v1310_v45 = vmul.f32 %v1269_v5, %v1118_v4  ;;  %v1274_v53 = vpop.permute.xlu0 %1273 }
 0x22c   : > { %v1387_v23 = vadd.f32 %v2563_v13, %v1348_v34  ;;  %v1311_v18 = vmul.f32 %v1274_v53, %v1119_v1 }
 0x22d   : > { %1418 = vst [vmem:[%s2573_s8 + $0xd8] sm:$0xff] %v1386_v39  ;;  %v1349_v3 = vmul.f32 %v2557_v57, %v1310_v45 }
 0x22e   : > { %1419 = vst [vmem:[%s2573_s8 + $0xe0] sm:$0xff] %v1387_v23  ;;  %v1350_v7 = vmul.f32 %v2557_v57, %v1311_v18  ;;  %v1279_v61 = vpop.permute.xlu1 %1278 }
 0x22f   : > { %v1388_v15 = vadd.f32 %v2563_v13, %v1349_v3  ;;  %v1312_v16 = vmul.f32 %v1279_v61, %v1120_v0 }
 0x230   : > { %v1389_v56 = vadd.f32 %v2563_v13, %v1350_v7 }
 0x231   : > { %1420 = vst [vmem:[%s2573_s8 + $0xe8] sm:$0xff] %v1388_v15  ;;  %v1351_v48 = vmul.f32 %v2557_v57, %v1312_v16 }
 0x232   : > { %1421 = vst [vmem:[%s2573_s8 + $0xf0] sm:$0xff] %v1389_v56 }
 0x233   : > { %v1390_v63 = vadd.f32 %v2563_v13, %v1351_v48 }
 0x235   : > { %1422 = vst [vmem:[%s2573_s8 + $0xf8] sm:$0xff] %v1390_v63 }
 0x236   : > { %2009 = shalt.err (!%p2006_p2)
}
 0x237   : > { %s2010_s9 = scalar_lea.hbm %s2764_s26, 4096  ;;  %s2014_s23 = scalar_lea.hbm %s2815_s3, 8192 }
 0x238   : > { %p2011_p4 = scmp.ne.s32.totalorder %s2764_s26, %s2010_s9  ;;  %p2015_p9 = scmp.lt.u32.totalorder %s2764_s26, %s2815_s3 }
 0x239   : > { %p2016_p1 = scmp.lt.u32.totalorder %s2014_s23, %s2010_s9  ;;  %p2018_p6 = scmp.lt.u32.totalorder %s2010_s9, %s2764_s26 }
 0x23a   : > { %p2012_p5 = pnand %p2011_p4, %p2828_p11 }
 0x23b   : > { %p2017_p3 = por %p2016_p1, %p2015_p9 }
 0x23c   : > { %p2013_p7 = pneg %p2012_p5 }
 0x23d   : > { %p2019_p12 = por %p2018_p6, %p2017_p3 }
 0x23f   : > { %p2020_p13 = pnand %p2019_p12, %p2013_p7 }
 0x241   : > { %2023 = shalt.err (!%p2020_p13)
}
 0x242   : > { %s2070_s7 = smov 128   ;;  %s2071_s8 = smov 8  }
 0x243   : > { %1818 = dma.vmem_to_hbm [thread:$0]  (%p2828_p11), %s2766_s19, 4096, %s2764_s26, %s1424_s16, %s2070_s7, %s2070_s7, %s2071_s8  }
 0x244 PF: > { %s1452_s17 = sand.u32 1, %s2050_s12   ;;  %p2829_p8 = scmp.ne.s32.totalorder %s2820_s25, 0 }
 0x245   : > { %p2830_p10 = scmp.ge.s32.totalorder %s2062_s15, 2  ;;  %s1453_s20 = scalar_lea.sflag [#allocation4], %s1452_s17 }
 0x247   : > { %p1825_p0 = pnand %p2830_p10, %p2829_p8 }
 0x249   : > { %2045 = dma.done.wait (!%p1825_p0), %s1453_s20, 4096  }
 0x24a   : > { %2047 = vsyncadd (!%p1825_p0), %s1453_s20, 4294963200  ;;  %p16_p2 = scmp.ge.s32.totalorder %s2117_s18, 4   ;;  %s2831_s12 = smov %s2054_s13 }
 0x24b   : > { %s2832_s13 = smov %s2058_s14  ;;  %s2833_s14 = smov %s2129_s21 }
 0x24c   : > { %s2834_s15 = smov %s2117_s18  ;;  %18 = sbr.rel (!%p16_p2) target bundleno = 5 (0x5), region = 77 }
 0x253   :  { %1458 = vsyncpa [#allocation3], 1 }
 0x254   :  { %1460 = vsyncpa [#allocation3 + $0x1], 1 }
 0x255   :  { %1461 = vsyncpa [#allocation4], 1 }
 0x256   :  { %1463 = vsyncpa [#allocation4 + $0x1], 1 }

</bundles_post_ra>
